<compile_context>
chip_gen: v7x
topology: tpu7x:2x2x1
jax: 0.10.0
libtpu: 0.0.40
codegen_flags: <defaults>
</compile_context>

<pallas_src>
import math

import jax
import jax.numpy as jnp
from jax.experimental import pallas as pl
from jax.experimental.pallas import tpu as pltpu

D = 4    # manifold_dim (even -> W(u) = J^T - J is generically invertible)
H = 128  # hidden width fixed by the module definition
B = 8    # batch size


# ----------------------------------------------------------------------------
# Kernel: one grid step == one batch block (default: the full batch).
# ----------------------------------------------------------------------------
def nsf_kernel(u_ref,
               w1tf_ref, w2tf_ref, w3tf_ref, w4tf_ref,     # fNN weights, (in, out) layout
               b1f_ref, b2f_ref, b3f_ref,                  # fNN hidden biases
               w1th_ref, w2th_ref, w3th_ref, w4th_ref,     # HNN weights, (in, out) layout
               b1h_ref, b2h_ref, b3h_ref, b4h_ref,         # HNN biases
               o_ref):
    f32 = jnp.float32
    u = u_ref[0]                                            # (Bb, D)
    bb, dd = u.shape

    # ---- grad_H = HNN(u): D -> 128 -> 128 -> 128 -> D with ReLU, whole batch ----
    g = jnp.maximum(jnp.dot(u, w1th_ref[...], preferred_element_type=f32) + b1h_ref[...], 0.0)
    g = jnp.maximum(jnp.dot(g, w2th_ref[...], preferred_element_type=f32) + b2h_ref[...], 0.0)
    g = jnp.maximum(jnp.dot(g, w3th_ref[...], preferred_element_type=f32) + b3h_ref[...], 0.0)
    g = jnp.dot(g, w4th_ref[...], preferred_element_type=f32) + b4h_ref[...]   # (Bb, D)

    # ---- fNN forward + analytic J^T chain, fused per hidden layer ----
    # J^T = W1^T D1 W2^T D2 W3^T D3 W4^T, with Dk = diag(relu'(z_k)).
    w1t = w1tf_ref[...]                                     # (D, H)
    hh = w1t.shape[1]
    z = jnp.dot(u, w1t, preferred_element_type=f32) + b1f_ref[...]   # (Bb, H)
    m = (z > 0.0).astype(f32)
    a = z * m
    # S row r = i*Bb + b  holds row i of (W1^T diag(m1_b))  -> shape (D*Bb, H)
    S = jnp.concatenate(
        [jnp.broadcast_to(w1t[i:i + 1, :], (bb, hh)) * m for i in range(dd)],
        axis=0)

    for wkt_ref, bk_ref in ((w2tf_ref, b2f_ref), (w3tf_ref, b3f_ref)):
        # one MXU operand carries both the forward activations and the Jacobian rows
        T = jnp.dot(jnp.concatenate([a, S], axis=0), wkt_ref[...],
                    preferred_element_type=f32)             # (Bb + D*Bb, H)
        z = T[:bb, :] + bk_ref[...]
        m = (z > 0.0).astype(f32)
        a = z * m
        S = T[bb:, :] * jnp.tile(m, (dd, 1))

    # Jt row i*Bb + b, column j  ==  (J_b^T)[i, j]
    Jt = jnp.dot(S, w4tf_ref[...], preferred_element_type=f32)       # (D*Bb, D)

    def ent(i, j):
        return Jt[i * bb:(i + 1) * bb, j:j + 1]             # (Bb, 1), 8-aligned static slice

    # W(u) = J^T - J is skew-symmetric; its 6 independent entries, batched:
    wa = ent(0, 1) - ent(1, 0)
    wb = ent(0, 2) - ent(2, 0)
    wc = ent(0, 3) - ent(3, 0)
    wd = ent(1, 2) - ent(2, 1)
    we = ent(1, 3) - ent(3, 1)
    wf = ent(2, 3) - ent(3, 2)

    # Closed-form 4x4 skew inverse via the Pfaffian:
    #   pf = a*f - b*e + c*d,  det = pf^2
    #   W^{-1} = (1/pf) [[0,-f, e,-d],[ f,0,-c, b],[-e, c,0,-a],[ d,-b, a,0]]
    # Solve W(u)^T X = grad_H  <=>  x_row = g_row @ W(u)^{-1}.
    pf = wa * wf - wb * we + wc * wd                        # (Bb, 1)
    inv_pf = 1.0 / pf                                       # (no guard, matches linalg.solve)

    g0 = g[:, 0:1]
    g1 = g[:, 1:2]
    g2 = g[:, 2:3]
    g3 = g[:, 3:4]
    x0 = (g1 * wf - g2 * we + g3 * wd) * inv_pf
    x1 = (-g0 * wf + g2 * wc - g3 * wb) * inv_pf
    x2 = (g0 * we - g1 * wc + g3 * wa) * inv_pf
    x3 = (-g0 * wd + g1 * wb - g2 * wa) * inv_pf

    # Single contiguous block store for the whole batch tile.
    o_ref[...] = jnp.concatenate([x0, x1, x2, x3], axis=1)[None]


# ----------------------------------------------------------------------------
# Wrapper
# ----------------------------------------------------------------------------
def neural_symplectic_form(u, params, num_blocks=1):
    # num_blocks=2 shards the batch over two grid steps marked "parallel"
    # (useful on v7x's dual TensorCores; single-step default elsewhere).
    b, d = u.shape
    assert d == D == 4, "closed-form Pfaffian inverse is specialized to manifold_dim == 4"
    assert b % num_blocks == 0
    bb = b // num_blocks

    (w1f, b1f, w2f, b2f, w3f, b3f, w4f, b4f,
     w1h, b1h, w2h, b2h, w3h, b3h, w4h, b4h) = params
    del b4f  # fNN output bias does not affect the Jacobian

    args = [
        u.reshape(num_blocks, bb, D).astype(jnp.float32),
        w1f.T, w2f.T, w3f.T, w4f.T,
        b1f.reshape(1, H), b2f.reshape(1, H), b3f.reshape(1, H),
        w1h.T, w2h.T, w3h.T, w4h.T,
        b1h.reshape(1, H), b2h.reshape(1, H), b3h.reshape(1, H), b4h.reshape(1, D),
    ]

    in_specs = [pl.BlockSpec((1, bb, D), lambda i: (i, 0, 0))]
    for a in args[1:]:
        in_specs.append(pl.BlockSpec(a.shape, lambda i: (0, 0)))

    out = pl.pallas_call(
        nsf_kernel,
        out_shape=jax.ShapeDtypeStruct((num_blocks, bb, D), jnp.float32),
        grid=(num_blocks,),
        in_specs=in_specs,
        out_specs=pl.BlockSpec((1, bb, D), lambda i: (i, 0, 0)),
        compiler_params=pltpu.CompilerParams(dimension_semantics=("parallel",)),
    )(*args)
    return out.reshape(b, D)


# ----------------------------------------------------------------------------
# Deterministic parameter init (mirrors torch.nn.Linear default U(-1/sqrt(in), 1/sqrt(in)))
# ----------------------------------------------------------------------------
def init_params(key):
    dims = [(D, H), (H, H), (H, H), (H, D)]  # (fan_in, fan_out) per layer
    params = []
    for _net in range(2):                    # fNN then HNN
        for fan_in, fan_out in dims:
            key, kw, kb = jax.random.split(key, 3)
            bound = 1.0 / math.sqrt(fan_in)
            W = jax.random.uniform(kw, (fan_out, fan_in), jnp.float32, -bound, bound)
            bvec = jax.random.uniform(kb, (fan_out,), jnp.float32, -bound, bound)
            params += [W, bvec]
    return tuple(params)


# ----------------------------------------------------------------------------
# Pure-JAX reference (same semantics as the PyTorch module)
# ----------------------------------------------------------------------------
def _mlp(v, W1, b1, W2, b2, W3, b3, W4, b4):
    x = jnp.maximum(v @ W1.T + b1, 0.0)
    x = jnp.maximum(x @ W2.T + b2, 0.0)
    x = jnp.maximum(x @ W3.T + b3, 0.0)
    return x @ W4.T + b4


def reference(u, params):
    (w1f, b1f, w2f, b2f, w3f, b3f, w4f, b4f,
     w1h, b1h, w2h, b2h, w3h, b3h, w4h, b4h) = params
    fnn = lambda v: _mlp(v, w1f, b1f, w2f, b2f, w3f, b3f, w4f, b4f)
    hnn = lambda v: _mlp(v, w1h, b1h, w2h, b2h, w3h, b3h, w4h, b4h)
    J = jax.vmap(jax.jacrev(fnn))(u)                       # (B, D, D)
    Wu = jnp.transpose(J, (0, 2, 1)) - J
    g = jax.vmap(hnn)(u)                                   # (B, D)
    X = jnp.linalg.solve(jnp.transpose(Wu, (0, 2, 1)), g[..., None])[..., 0]
    return X


if __name__ == "__main__":
    key = jax.random.PRNGKey(0)
    pkey, ukey = jax.random.split(key)
    params = init_params(pkey)
    u = jax.random.normal(ukey, (B, D), jnp.float32)

    x = neural_symplectic_form(u, params)
    x = jax.block_until_ready(x)

    x_ref = reference(u, params)
    rel = float(jnp.max(jnp.abs(x - x_ref)) / (jnp.max(jnp.abs(x_ref)) + 1e-6))
    assert bool(jnp.all(jnp.isfinite(x))) and rel < 5e-2, f"mismatch rel={rel}"
    print("KERNEL_OK")
</pallas_src>

<mosaic_0001>
module attributes {stable_mosaic.version = 11 : i64} {
  func.func @nsf_kernel(%arg0: i32, %arg1: memref<1x8x4xf32, #tpu.memory_space<vmem>>, %arg2: memref<4x128xf32, #tpu.memory_space<vmem>>, %arg3: memref<128x128xf32, #tpu.memory_space<vmem>>, %arg4: memref<128x128xf32, #tpu.memory_space<vmem>>, %arg5: memref<128x4xf32, #tpu.memory_space<vmem>>, %arg6: memref<1x128xf32, #tpu.memory_space<vmem>>, %arg7: memref<1x128xf32, #tpu.memory_space<vmem>>, %arg8: memref<1x128xf32, #tpu.memory_space<vmem>>, %arg9: memref<4x128xf32, #tpu.memory_space<vmem>>, %arg10: memref<128x128xf32, #tpu.memory_space<vmem>>, %arg11: memref<128x128xf32, #tpu.memory_space<vmem>>, %arg12: memref<128x4xf32, #tpu.memory_space<vmem>>, %arg13: memref<1x128xf32, #tpu.memory_space<vmem>>, %arg14: memref<1x128xf32, #tpu.memory_space<vmem>>, %arg15: memref<1x128xf32, #tpu.memory_space<vmem>>, %arg16: memref<1x4xf32, #tpu.memory_space<vmem>>, %arg17: memref<1x8x4xf32, #tpu.memory_space<vmem>>) attributes {dimension_semantics = [#tpu.dimension_semantics<parallel>], iteration_bounds = array<i64: 1>, scalar_prefetch = 0 : i64, scratch_operands = 0 : i64, tpu.core_type = #tpu.core_type<tc>, window_params = [{transform_indices = @transform_0, window_bounds = array<i64: 1, 8, 4>}, {pipeline_mode = #tpu.pipeline_mode<synchronous>, transform_indices = @transform_1, window_bounds = array<i64: 4, 128>}, {pipeline_mode = #tpu.pipeline_mode<synchronous>, transform_indices = @transform_2, window_bounds = array<i64: 128, 128>}, {pipeline_mode = #tpu.pipeline_mode<synchronous>, transform_indices = @transform_3, window_bounds = array<i64: 128, 128>}, {pipeline_mode = #tpu.pipeline_mode<synchronous>, transform_indices = @transform_4, window_bounds = array<i64: 128, 4>}, {pipeline_mode = #tpu.pipeline_mode<synchronous>, transform_indices = @transform_5, window_bounds = array<i64: 1, 128>}, {pipeline_mode = #tpu.pipeline_mode<synchronous>, transform_indices = @transform_6, window_bounds = array<i64: 1, 128>}, {pipeline_mode = #tpu.pipeline_mode<synchronous>, transform_indices = @transform_7, window_bounds = array<i64: 1, 128>}, {pipeline_mode = #tpu.pipeline_mode<synchronous>, transform_indices = @transform_8, window_bounds = array<i64: 4, 128>}, {pipeline_mode = #tpu.pipeline_mode<synchronous>, transform_indices = @transform_9, window_bounds = array<i64: 128, 128>}, {pipeline_mode = #tpu.pipeline_mode<synchronous>, transform_indices = @transform_10, window_bounds = array<i64: 128, 128>}, {pipeline_mode = #tpu.pipeline_mode<synchronous>, transform_indices = @transform_11, window_bounds = array<i64: 128, 4>}, {pipeline_mode = #tpu.pipeline_mode<synchronous>, transform_indices = @transform_12, window_bounds = array<i64: 1, 128>}, {pipeline_mode = #tpu.pipeline_mode<synchronous>, transform_indices = @transform_13, window_bounds = array<i64: 1, 128>}, {pipeline_mode = #tpu.pipeline_mode<synchronous>, transform_indices = @transform_14, window_bounds = array<i64: 1, 128>}, {pipeline_mode = #tpu.pipeline_mode<synchronous>, transform_indices = @transform_15, window_bounds = array<i64: 1, 4>}, {transform_indices = @transform_16, window_bounds = array<i64: 1, 8, 4>}]} {
    %c0 = arith.constant 0 : index
    %c0_0 = arith.constant 0 : index
    %c0_1 = arith.constant 0 : index
    %0 = vector.load %arg1[%c0, %c0_0, %c0_1] : memref<1x8x4xf32, #tpu.memory_space<vmem>>, vector<1x8x4xf32>
    %1 = vector.shape_cast %0 : vector<1x8x4xf32> to vector<8x4xf32>
    %c0_2 = arith.constant 0 : index
    %c0_3 = arith.constant 0 : index
    %2 = vector.load %arg9[%c0_2, %c0_3] : memref<4x128xf32, #tpu.memory_space<vmem>>, vector<4x128xf32>
    %cst = arith.constant dense<0.000000e+00> : vector<8x128xf32>
    %3 = tpu.matmul %1, %2, %cst {dimension_numbers = #tpu.dot_dimension_numbers<[1], [0], [0], [1], [0, 0, 1, 1], [], []>} : vector<8x4xf32>, vector<4x128xf32>, vector<8x128xf32> -> vector<8x128xf32>
    %c0_4 = arith.constant 0 : index
    %c0_5 = arith.constant 0 : index
    %4 = vector.load %arg13[%c0_4, %c0_5] : memref<1x128xf32, #tpu.memory_space<vmem>>, vector<1x128xf32>
    %5 = vector.broadcast %4 : vector<1x128xf32> to vector<8x128xf32>
    %6 = arith.addf %3, %5 : vector<8x128xf32>
    %cst_6 = arith.constant 0.000000e+00 : f32
    %7 = vector.broadcast %cst_6 : f32 to vector<8x128xf32>
    %8 = arith.maximumf %6, %7 : vector<8x128xf32>
    %c0_7 = arith.constant 0 : index
    %c0_8 = arith.constant 0 : index
    %9 = vector.load %arg10[%c0_7, %c0_8] : memref<128x128xf32, #tpu.memory_space<vmem>>, vector<128x128xf32>
    %cst_9 = arith.constant dense<0.000000e+00> : vector<8x128xf32>
    %10 = tpu.matmul %8, %9, %cst_9 {dimension_numbers = #tpu.dot_dimension_numbers<[1], [0], [0], [1], [0, 0, 1, 1], [], []>} : vector<8x128xf32>, vector<128x128xf32>, vector<8x128xf32> -> vector<8x128xf32>
    %c0_10 = arith.constant 0 : index
    %c0_11 = arith.constant 0 : index
    %11 = vector.load %arg14[%c0_10, %c0_11] : memref<1x128xf32, #tpu.memory_space<vmem>>, vector<1x128xf32>
    %12 = vector.broadcast %11 : vector<1x128xf32> to vector<8x128xf32>
    %13 = arith.addf %10, %12 : vector<8x128xf32>
    %cst_12 = arith.constant 0.000000e+00 : f32
    %14 = vector.broadcast %cst_12 : f32 to vector<8x128xf32>
    %15 = arith.maximumf %13, %14 : vector<8x128xf32>
    %c0_13 = arith.constant 0 : index
    %c0_14 = arith.constant 0 : index
    %16 = vector.load %arg11[%c0_13, %c0_14] : memref<128x128xf32, #tpu.memory_space<vmem>>, vector<128x128xf32>
    %cst_15 = arith.constant dense<0.000000e+00> : vector<8x128xf32>
    %17 = tpu.matmul %15, %16, %cst_15 {dimension_numbers = #tpu.dot_dimension_numbers<[1], [0], [0], [1], [0, 0, 1, 1], [], []>} : vector<8x128xf32>, vector<128x128xf32>, vector<8x128xf32> -> vector<8x128xf32>
    %c0_16 = arith.constant 0 : index
    %c0_17 = arith.constant 0 : index
    %18 = vector.load %arg15[%c0_16, %c0_17] : memref<1x128xf32, #tpu.memory_space<vmem>>, vector<1x128xf32>
    %19 = vector.broadcast %18 : vector<1x128xf32> to vector<8x128xf32>
    %20 = arith.addf %17, %19 : vector<8x128xf32>
    %cst_18 = arith.constant 0.000000e+00 : f32
    %21 = vector.broadcast %cst_18 : f32 to vector<8x128xf32>
    %22 = arith.maximumf %20, %21 : vector<8x128xf32>
    %c0_19 = arith.constant 0 : index
    %c0_20 = arith.constant 0 : index
    %23 = vector.load %arg12[%c0_19, %c0_20] : memref<128x4xf32, #tpu.memory_space<vmem>>, vector<128x4xf32>
    %cst_21 = arith.constant dense<0.000000e+00> : vector<8x4xf32>
    %24 = tpu.matmul %22, %23, %cst_21 {dimension_numbers = #tpu.dot_dimension_numbers<[1], [0], [0], [1], [0, 0, 1, 1], [], []>} : vector<8x128xf32>, vector<128x4xf32>, vector<8x4xf32> -> vector<8x4xf32>
    %c0_22 = arith.constant 0 : index
    %c0_23 = arith.constant 0 : index
    %25 = vector.load %arg16[%c0_22, %c0_23] : memref<1x4xf32, #tpu.memory_space<vmem>>, vector<1x4xf32>
    %26 = vector.broadcast %25 : vector<1x4xf32> to vector<8x4xf32>
    %27 = arith.addf %24, %26 : vector<8x4xf32>
    %c0_24 = arith.constant 0 : index
    %c0_25 = arith.constant 0 : index
    %28 = vector.load %arg2[%c0_24, %c0_25] : memref<4x128xf32, #tpu.memory_space<vmem>>, vector<4x128xf32>
    %cst_26 = arith.constant dense<0.000000e+00> : vector<8x128xf32>
    %29 = tpu.matmul %1, %28, %cst_26 {dimension_numbers = #tpu.dot_dimension_numbers<[1], [0], [0], [1], [0, 0, 1, 1], [], []>} : vector<8x4xf32>, vector<4x128xf32>, vector<8x128xf32> -> vector<8x128xf32>
    %c0_27 = arith.constant 0 : index
    %c0_28 = arith.constant 0 : index
    %30 = vector.load %arg6[%c0_27, %c0_28] : memref<1x128xf32, #tpu.memory_space<vmem>>, vector<1x128xf32>
    %31 = vector.broadcast %30 : vector<1x128xf32> to vector<8x128xf32>
    %32 = arith.addf %29, %31 : vector<8x128xf32>
    %cst_29 = arith.constant 0.000000e+00 : f32
    %33 = vector.broadcast %cst_29 : f32 to vector<8x128xf32>
    %34 = arith.cmpf ogt, %32, %33 : vector<8x128xf32>
    %35 = arith.extui %34 : vector<8x128xi1> to vector<8x128xi32>
    %36 = arith.sitofp %35 : vector<8x128xi32> to vector<8x128xf32>
    %37 = arith.mulf %32, %36 : vector<8x128xf32>
    %38 = vector.extract_strided_slice %28 {offsets = [0, 0], sizes = [1, 128], strides = [1, 1]} : vector<4x128xf32> to vector<1x128xf32>
    %39 = vector.shape_cast %38 : vector<1x128xf32> to vector<1x128xf32>
    %40 = vector.broadcast %39 : vector<1x128xf32> to vector<8x128xf32>
    %41 = arith.mulf %40, %36 : vector<8x128xf32>
    %42 = vector.extract_strided_slice %28 {offsets = [1, 0], sizes = [1, 128], strides = [1, 1]} : vector<4x128xf32> to vector<1x128xf32>
    %43 = vector.shape_cast %42 : vector<1x128xf32> to vector<1x128xf32>
    %44 = vector.broadcast %43 : vector<1x128xf32> to vector<8x128xf32>
    %45 = arith.mulf %44, %36 : vector<8x128xf32>
    %46 = vector.extract_strided_slice %28 {offsets = [2, 0], sizes = [1, 128], strides = [1, 1]} : vector<4x128xf32> to vector<1x128xf32>
    %47 = vector.shape_cast %46 : vector<1x128xf32> to vector<1x128xf32>
    %48 = vector.broadcast %47 : vector<1x128xf32> to vector<8x128xf32>
    %49 = arith.mulf %48, %36 : vector<8x128xf32>
    %50 = vector.extract_strided_slice %28 {offsets = [3, 0], sizes = [1, 128], strides = [1, 1]} : vector<4x128xf32> to vector<1x128xf32>
    %51 = vector.shape_cast %50 : vector<1x128xf32> to vector<1x128xf32>
    %52 = vector.broadcast %51 : vector<1x128xf32> to vector<8x128xf32>
    %53 = arith.mulf %52, %36 : vector<8x128xf32>
    %54 = tpu.concatenate %41, %45, %49, %53 in 0 : vector<8x128xf32>, vector<8x128xf32>, vector<8x128xf32>, vector<8x128xf32> -> vector<32x128xf32>
    %55 = tpu.concatenate %37, %54 in 0 : vector<8x128xf32>, vector<32x128xf32> -> vector<40x128xf32>
    %c0_30 = arith.constant 0 : index
    %c0_31 = arith.constant 0 : index
    %56 = vector.load %arg3[%c0_30, %c0_31] : memref<128x128xf32, #tpu.memory_space<vmem>>, vector<128x128xf32>
    %cst_32 = arith.constant dense<0.000000e+00> : vector<40x128xf32>
    %57 = tpu.matmul %55, %56, %cst_32 {dimension_numbers = #tpu.dot_dimension_numbers<[1], [0], [0], [1], [0, 0, 1, 1], [], []>} : vector<40x128xf32>, vector<128x128xf32>, vector<40x128xf32> -> vector<40x128xf32>
    %58 = vector.extract_strided_slice %57 {offsets = [0, 0], sizes = [8, 128], strides = [1, 1]} : vector<40x128xf32> to vector<8x128xf32>
    %c0_33 = arith.constant 0 : index
    %c0_34 = arith.constant 0 : index
    %59 = vector.load %arg7[%c0_33, %c0_34] : memref<1x128xf32, #tpu.memory_space<vmem>>, vector<1x128xf32>
    %60 = vector.broadcast %59 : vector<1x128xf32> to vector<8x128xf32>
    %61 = arith.addf %58, %60 : vector<8x128xf32>
    %cst_35 = arith.constant 0.000000e+00 : f32
    %62 = vector.broadcast %cst_35 : f32 to vector<8x128xf32>
    %63 = arith.cmpf ogt, %61, %62 : vector<8x128xf32>
    %64 = arith.extui %63 : vector<8x128xi1> to vector<8x128xi32>
    %65 = arith.sitofp %64 : vector<8x128xi32> to vector<8x128xf32>
    %66 = arith.mulf %61, %65 : vector<8x128xf32>
    %67 = vector.extract_strided_slice %57 {offsets = [8, 0], sizes = [32, 128], strides = [1, 1]} : vector<40x128xf32> to vector<32x128xf32>
    %68 = tpu.concatenate %65, %65, %65, %65 in 0 : vector<8x128xf32>, vector<8x128xf32>, vector<8x128xf32>, vector<8x128xf32> -> vector<32x128xf32>
    %69 = arith.mulf %67, %68 : vector<32x128xf32>
    %70 = tpu.concatenate %66, %69 in 0 : vector<8x128xf32>, vector<32x128xf32> -> vector<40x128xf32>
    %c0_36 = arith.constant 0 : index
    %c0_37 = arith.constant 0 : index
    %71 = vector.load %arg4[%c0_36, %c0_37] : memref<128x128xf32, #tpu.memory_space<vmem>>, vector<128x128xf32>
    %cst_38 = arith.constant dense<0.000000e+00> : vector<40x128xf32>
    %72 = tpu.matmul %70, %71, %cst_38 {dimension_numbers = #tpu.dot_dimension_numbers<[1], [0], [0], [1], [0, 0, 1, 1], [], []>} : vector<40x128xf32>, vector<128x128xf32>, vector<40x128xf32> -> vector<40x128xf32>
    %73 = vector.extract_strided_slice %72 {offsets = [0, 0], sizes = [8, 128], strides = [1, 1]} : vector<40x128xf32> to vector<8x128xf32>
    %c0_39 = arith.constant 0 : index
    %c0_40 = arith.constant 0 : index
    %74 = vector.load %arg8[%c0_39, %c0_40] : memref<1x128xf32, #tpu.memory_space<vmem>>, vector<1x128xf32>
    %75 = vector.broadcast %74 : vector<1x128xf32> to vector<8x128xf32>
    %76 = arith.addf %73, %75 : vector<8x128xf32>
    %cst_41 = arith.constant 0.000000e+00 : f32
    %77 = vector.broadcast %cst_41 : f32 to vector<8x128xf32>
    %78 = arith.cmpf ogt, %76, %77 : vector<8x128xf32>
    %79 = arith.extui %78 : vector<8x128xi1> to vector<8x128xi32>
    %80 = arith.sitofp %79 : vector<8x128xi32> to vector<8x128xf32>
    %81 = vector.extract_strided_slice %72 {offsets = [8, 0], sizes = [32, 128], strides = [1, 1]} : vector<40x128xf32> to vector<32x128xf32>
    %82 = tpu.concatenate %80, %80, %80, %80 in 0 : vector<8x128xf32>, vector<8x128xf32>, vector<8x128xf32>, vector<8x128xf32> -> vector<32x128xf32>
    %83 = arith.mulf %81, %82 : vector<32x128xf32>
    %c0_42 = arith.constant 0 : index
    %c0_43 = arith.constant 0 : index
    %84 = vector.load %arg5[%c0_42, %c0_43] : memref<128x4xf32, #tpu.memory_space<vmem>>, vector<128x4xf32>
    %cst_44 = arith.constant dense<0.000000e+00> : vector<32x4xf32>
    %85 = tpu.matmul %83, %84, %cst_44 {dimension_numbers = #tpu.dot_dimension_numbers<[1], [0], [0], [1], [0, 0, 1, 1], [], []>} : vector<32x128xf32>, vector<128x4xf32>, vector<32x4xf32> -> vector<32x4xf32>
    %86 = vector.extract_strided_slice %85 {offsets = [0, 1], sizes = [8, 1], strides = [1, 1]} : vector<32x4xf32> to vector<8x1xf32>
    %87 = vector.extract_strided_slice %85 {offsets = [8, 0], sizes = [8, 1], strides = [1, 1]} : vector<32x4xf32> to vector<8x1xf32>
    %88 = arith.subf %86, %87 : vector<8x1xf32>
    %89 = vector.extract_strided_slice %85 {offsets = [0, 2], sizes = [8, 1], strides = [1, 1]} : vector<32x4xf32> to vector<8x1xf32>
    %90 = vector.extract_strided_slice %85 {offsets = [16, 0], sizes = [8, 1], strides = [1, 1]} : vector<32x4xf32> to vector<8x1xf32>
    %91 = arith.subf %89, %90 : vector<8x1xf32>
    %92 = vector.extract_strided_slice %85 {offsets = [0, 3], sizes = [8, 1], strides = [1, 1]} : vector<32x4xf32> to vector<8x1xf32>
    %93 = vector.extract_strided_slice %85 {offsets = [24, 0], sizes = [8, 1], strides = [1, 1]} : vector<32x4xf32> to vector<8x1xf32>
    %94 = arith.subf %92, %93 : vector<8x1xf32>
    %95 = vector.extract_strided_slice %85 {offsets = [8, 2], sizes = [8, 1], strides = [1, 1]} : vector<32x4xf32> to vector<8x1xf32>
    %96 = vector.extract_strided_slice %85 {offsets = [16, 1], sizes = [8, 1], strides = [1, 1]} : vector<32x4xf32> to vector<8x1xf32>
    %97 = arith.subf %95, %96 : vector<8x1xf32>
    %98 = vector.extract_strided_slice %85 {offsets = [8, 3], sizes = [8, 1], strides = [1, 1]} : vector<32x4xf32> to vector<8x1xf32>
    %99 = vector.extract_strided_slice %85 {offsets = [24, 1], sizes = [8, 1], strides = [1, 1]} : vector<32x4xf32> to vector<8x1xf32>
    %100 = arith.subf %98, %99 : vector<8x1xf32>
    %101 = vector.extract_strided_slice %85 {offsets = [16, 3], sizes = [8, 1], strides = [1, 1]} : vector<32x4xf32> to vector<8x1xf32>
    %102 = vector.extract_strided_slice %85 {offsets = [24, 2], sizes = [8, 1], strides = [1, 1]} : vector<32x4xf32> to vector<8x1xf32>
    %103 = arith.subf %101, %102 : vector<8x1xf32>
    %104 = arith.mulf %88, %103 : vector<8x1xf32>
    %105 = arith.mulf %91, %100 : vector<8x1xf32>
    %106 = arith.subf %104, %105 : vector<8x1xf32>
    %107 = arith.mulf %94, %97 : vector<8x1xf32>
    %108 = arith.addf %106, %107 : vector<8x1xf32>
    %cst_45 = arith.constant 1.000000e+00 : f32
    %109 = vector.broadcast %cst_45 : f32 to vector<8x1xf32>
    %110 = arith.divf %109, %108 : vector<8x1xf32>
    %111 = vector.extract_strided_slice %27 {offsets = [0, 0], sizes = [8, 1], strides = [1, 1]} : vector<8x4xf32> to vector<8x1xf32>
    %112 = vector.extract_strided_slice %27 {offsets = [0, 1], sizes = [8, 1], strides = [1, 1]} : vector<8x4xf32> to vector<8x1xf32>
    %113 = vector.extract_strided_slice %27 {offsets = [0, 2], sizes = [8, 1], strides = [1, 1]} : vector<8x4xf32> to vector<8x1xf32>
    %114 = vector.extract_strided_slice %27 {offsets = [0, 3], sizes = [8, 1], strides = [1, 1]} : vector<8x4xf32> to vector<8x1xf32>
    %115 = arith.mulf %112, %103 : vector<8x1xf32>
    %116 = arith.mulf %113, %100 : vector<8x1xf32>
    %117 = arith.subf %115, %116 : vector<8x1xf32>
    %118 = arith.mulf %114, %97 : vector<8x1xf32>
    %119 = arith.addf %117, %118 : vector<8x1xf32>
    %120 = arith.mulf %119, %110 : vector<8x1xf32>
    %cst_46 = arith.constant 0.000000e+00 : f32
    %121 = vector.broadcast %cst_46 : f32 to vector<8x1xf32>
    %122 = arith.subf %121, %111 : vector<8x1xf32>
    %123 = arith.mulf %122, %103 : vector<8x1xf32>
    %124 = arith.mulf %113, %94 : vector<8x1xf32>
    %125 = arith.addf %123, %124 : vector<8x1xf32>
    %126 = arith.mulf %114, %91 : vector<8x1xf32>
    %127 = arith.subf %125, %126 : vector<8x1xf32>
    %128 = arith.mulf %127, %110 : vector<8x1xf32>
    %129 = arith.mulf %111, %100 : vector<8x1xf32>
    %130 = arith.mulf %112, %94 : vector<8x1xf32>
    %131 = arith.subf %129, %130 : vector<8x1xf32>
    %132 = arith.mulf %114, %88 : vector<8x1xf32>
    %133 = arith.addf %131, %132 : vector<8x1xf32>
    %134 = arith.mulf %133, %110 : vector<8x1xf32>
    %cst_47 = arith.constant 0.000000e+00 : f32
    %135 = vector.broadcast %cst_47 : f32 to vector<8x1xf32>
    %136 = arith.subf %135, %111 : vector<8x1xf32>
    %137 = arith.mulf %136, %97 : vector<8x1xf32>
    %138 = arith.mulf %112, %91 : vector<8x1xf32>
    %139 = arith.addf %137, %138 : vector<8x1xf32>
    %140 = arith.mulf %113, %88 : vector<8x1xf32>
    %141 = arith.subf %139, %140 : vector<8x1xf32>
    %142 = arith.mulf %141, %110 : vector<8x1xf32>
    %143 = tpu.concatenate %120, %128, %134, %142 in 1 : vector<8x1xf32>, vector<8x1xf32>, vector<8x1xf32>, vector<8x1xf32> -> vector<8x4xf32>
    %144 = vector.shape_cast %143 : vector<8x4xf32> to vector<1x8x4xf32>
    %c0_48 = arith.constant 0 : index
    %c0_49 = arith.constant 0 : index
    %c0_50 = arith.constant 0 : index
    %145 = vector.load %arg17[%c0_48, %c0_49, %c0_50] : memref<1x8x4xf32, #tpu.memory_space<vmem>>, vector<1x8x4xf32>
    tpu.vector_store %arg17[%c0_48, %c0_49, %c0_50], %144 {strides = array<i32>} : memref<1x8x4xf32, #tpu.memory_space<vmem>>, vector<1x8x4xf32>,
    return
  }
  func.func @transform_0(%arg0: i32) -> (i32, i32, i32) {
    %c0_i32 = arith.constant 0 : i32
    %c0_i32_0 = arith.constant 0 : i32
    %c0_i32_1 = arith.constant 0 : i32
    return %arg0, %c0_i32, %c0_i32_0 : i32, i32, i32
  }
  func.func @transform_1(%arg0: i32) -> (i32, i32) {
    %c0_i32 = arith.constant 0 : i32
    %c0_i32_0 = arith.constant 0 : i32
    %c0_i32_1 = arith.constant 0 : i32
    return %c0_i32, %c0_i32_0 : i32, i32
  }
  func.func @transform_2(%arg0: i32) -> (i32, i32) {
    %c0_i32 = arith.constant 0 : i32
    %c0_i32_0 = arith.constant 0 : i32
    %c0_i32_1 = arith.constant 0 : i32
    return %c0_i32, %c0_i32_0 : i32, i32
  }
  func.func @transform_3(%arg0: i32) -> (i32, i32) {
    %c0_i32 = arith.constant 0 : i32
    %c0_i32_0 = arith.constant 0 : i32
    %c0_i32_1 = arith.constant 0 : i32
    return %c0_i32, %c0_i32_0 : i32, i32
  }
  func.func @transform_4(%arg0: i32) -> (i32, i32) {
    %c0_i32 = arith.constant 0 : i32
    %c0_i32_0 = arith.constant 0 : i32
    %c0_i32_1 = arith.constant 0 : i32
    return %c0_i32, %c0_i32_0 : i32, i32
  }
  func.func @transform_5(%arg0: i32) -> (i32, i32) {
    %c0_i32 = arith.constant 0 : i32
    %c0_i32_0 = arith.constant 0 : i32
    %c0_i32_1 = arith.constant 0 : i32
    return %c0_i32, %c0_i32_0 : i32, i32
  }
  func.func @transform_6(%arg0: i32) -> (i32, i32) {
    %c0_i32 = arith.constant 0 : i32
    %c0_i32_0 = arith.constant 0 : i32
    %c0_i32_1 = arith.constant 0 : i32
    return %c0_i32, %c0_i32_0 : i32, i32
  }
  func.func @transform_7(%arg0: i32) -> (i32, i32) {
    %c0_i32 = arith.constant 0 : i32
    %c0_i32_0 = arith.constant 0 : i32
    %c0_i32_1 = arith.constant 0 : i32
    return %c0_i32, %c0_i32_0 : i32, i32
  }
  func.func @transform_8(%arg0: i32) -> (i32, i32) {
    %c0_i32 = arith.constant 0 : i32
    %c0_i32_0 = arith.constant 0 : i32
    %c0_i32_1 = arith.constant 0 : i32
    return %c0_i32, %c0_i32_0 : i32, i32
  }
  func.func @transform_9(%arg0: i32) -> (i32, i32) {
    %c0_i32 = arith.constant 0 : i32
    %c0_i32_0 = arith.constant 0 : i32
    %c0_i32_1 = arith.constant 0 : i32
    return %c0_i32, %c0_i32_0 : i32, i32
  }
  func.func @transform_10(%arg0: i32) -> (i32, i32) {
    %c0_i32 = arith.constant 0 : i32
    %c0_i32_0 = arith.constant 0 : i32
    %c0_i32_1 = arith.constant 0 : i32
    return %c0_i32, %c0_i32_0 : i32, i32
  }
  func.func @transform_11(%arg0: i32) -> (i32, i32) {
    %c0_i32 = arith.constant 0 : i32
    %c0_i32_0 = arith.constant 0 : i32
    %c0_i32_1 = arith.constant 0 : i32
    return %c0_i32, %c0_i32_0 : i32, i32
  }
  func.func @transform_12(%arg0: i32) -> (i32, i32) {
    %c0_i32 = arith.constant 0 : i32
    %c0_i32_0 = arith.constant 0 : i32
    %c0_i32_1 = arith.constant 0 : i32
    return %c0_i32, %c0_i32_0 : i32, i32
  }
  func.func @transform_13(%arg0: i32) -> (i32, i32) {
    %c0_i32 = arith.constant 0 : i32
    %c0_i32_0 = arith.constant 0 : i32
    %c0_i32_1 = arith.constant 0 : i32
    return %c0_i32, %c0_i32_0 : i32, i32
  }
  func.func @transform_14(%arg0: i32) -> (i32, i32) {
    %c0_i32 = arith.constant 0 : i32
    %c0_i32_0 = arith.constant 0 : i32
    %c0_i32_1 = arith.constant 0 : i32
    return %c0_i32, %c0_i32_0 : i32, i32
  }
  func.func @transform_15(%arg0: i32) -> (i32, i32) {
    %c0_i32 = arith.constant 0 : i32
    %c0_i32_0 = arith.constant 0 : i32
    %c0_i32_1 = arith.constant 0 : i32
    return %c0_i32, %c0_i32_0 : i32, i32
  }
  func.func @transform_16(%arg0: i32) -> (i32, i32, i32) {
    %c0_i32 = arith.constant 0 : i32
    %c0_i32_0 = arith.constant 0 : i32
    %c0_i32_1 = arith.constant 0 : i32
    return %arg0, %c0_i32, %c0_i32_0 : i32, i32, i32
  }
}

</mosaic_0001>

<bundles_post_ra>
// kernel: tpu_custom_call.1
= control target key start
LH: loop header
LB: loop body
LE: loop exit
PB: predicated region body
PF: predicated region fallthrough
CT: control target
= control target key end

     0   :  { %s2140_s0 = inlined_call_operand.vmem [shape: f32[1,8,4], index: 0, kind: input, shape index: {}]   ;;  %s2141_s1 = inlined_call_operand.vmem [shape: f32[4,128], index: 1, kind: input, shape index: {}]   ;;  %s2142_s2 = inlined_call_operand.vmem [shape: f32[128,128], index: 2, kind: input, shape index: {}]   ;;  %s2143_s3 = inlined_call_operand.vmem [shape: f32[128,128], index: 3, kind: input, shape index: {}]   ;;  %s2144_s4 = inlined_call_operand.vmem [shape: f32[128,4], index: 4, kind: input, shape index: {}]   ;;  %s2145_s5 = inlined_call_operand.vmem [shape: f32[1,128], index: 5, kind: input, shape index: {}]   ;;  %s2146_s6 = inlined_call_operand.vmem [shape: f32[1,128], index: 6, kind: input, shape index: {}]   ;;  %s2147_s7 = inlined_call_operand.vmem [shape: f32[1,128], index: 7, kind: input, shape index: {}]   ;;  %s2148_s8 = inlined_call_operand.vmem [shape: f32[4,128], index: 8, kind: input, shape index: {}]   ;;  %s2149_s9 = inlined_call_operand.hbm [shape: f32[128,128], index: 9, kind: input, shape index: {}]   ;;  %s2150_s10 = inlined_call_operand.hbm [shape: f32[128,128], index: 10, kind: input, shape index: {}]   ;;  %s2151_s11 = inlined_call_operand.vmem [shape: f32[128,4], index: 11, kind: input, shape index: {}]   ;;  %s2152_s12 = inlined_call_operand.vmem [shape: f32[1,128], index: 12, kind: input, shape index: {}]   ;;  %s2153_s13 = inlined_call_operand.vmem [shape: f32[1,128], index: 13, kind: input, shape index: {}]   ;;  %s2154_s14 = inlined_call_operand.vmem [shape: f32[1,128], index: 14, kind: input, shape index: {}]   ;;  %s2155_s15 = inlined_call_operand.vmem [shape: f32[1,4], index: 15, kind: input, shape index: {}]   ;;  %s2156_s16 = inlined_call_operand.vmem [shape: f32[1,8,4], index: 16, kind: output, shape index: {}]  }
   0x1   :  { %2157 = sst [smem:[#allocation8_spill]] %s2140_s0 }
   0x2   :  { %21 = vsyncpa [#allocation3], 0 }
   0x3   :  { %22 = vsyncpa [#allocation5], 0  ;;  %s1666_s21 = smov [#allocation2]   ;;  %s1618_s25 = scalar_lea.hbm %s2149_s9, 2048 }
   0x4   :  { %s46_s22 = sshll.u32 %s1666_s21, 4  ;;  %p1619_p0 = scmp.ne.s32.totalorder %s2149_s9, %s1618_s25  ;;  %s47_s22 = int_to_ptr.vmem [resolvable:$true] %s46_s22 }
   0x5   :  { %p1622_p1 = scmp.lt.u32.totalorder %s1618_s25, %s2149_s9 }
   0x7   :  { %p1624_p2 = pnand %p1622_p1, %p1619_p0 }
   0x9   :  { %1627 = shalt.err (!%p1624_p2)
}
   0xa   :  { %s1628_s30 = scalar_lea.vmem %s47_s22, 2048  ;;  %p1633_p4 = scmp.lt.s32.totalorder %s47_s22, %s47_s22 }
   0xb   :  { %p1629_p3 = scmp.ne.s32.totalorder %s47_s22, %s1628_s30  ;;  %p1634_p5 = scmp.lt.s32.totalorder %s1628_s30, %s1628_s30 }
   0xd   :  { %p1635_p6 = por %p1634_p5, %p1633_p4 }
   0xf   :  { %p1636_p7 = pnand %p1635_p6, %p1629_p3 }
  0x11   :  { %1639 = shalt.err (!%p1636_p7)
}
  0x12   :  { %s1667_s0 = smov 128   ;;  %s1668_s17 = smov 8  }
  0x13   :  { %52 = dma.hbm_to_vmem [thread:$0]  %s2149_s9, 2048, %s47_s22, [#allocation3], %s1667_s0, %s1667_s0, %s1668_s17  }
  0x14   :  { %s1669_s20 = smov [#allocation4]   ;;  %s1640_s25 = scalar_lea.hbm %s2150_s10, 2048 }
  0x15   :  { %s58_s21 = sshll.u32 %s1669_s20, 4  ;;  %p1641_p8 = scmp.ne.s32.totalorder %s2150_s10, %s1640_s25  ;;  %s59_s21 = int_to_ptr.vmem [resolvable:$true] %s58_s21 }
  0x16   :  { %p1644_p9 = scmp.lt.u32.totalorder %s1640_s25, %s2150_s10 }
  0x18   :  { %p1646_p10 = pnand %p1644_p9, %p1641_p8 }
  0x1a   :  { %1649 = shalt.err (!%p1646_p10)
}
  0x1b   :  { %s1650_s30 = scalar_lea.vmem %s59_s21, 2048  ;;  %p1655_p12 = scmp.lt.s32.totalorder %s59_s21, %s59_s21 }
  0x1c   :  { %p1651_p11 = scmp.ne.s32.totalorder %s59_s21, %s1650_s30  ;;  %p1656_p13 = scmp.lt.s32.totalorder %s1650_s30, %s1650_s30 }
  0x1e   :  { %p1657_p0 = por %p1656_p13, %p1655_p12 }
  0x20   :  { %p1658_p1 = pnand %p1657_p0, %p1651_p11 }
  0x22   :  { %1661 = shalt.err (!%p1658_p1)
}
  0x23   :  { %64 = dma.hbm_to_vmem [thread:$0]  %s2150_s10, 2048, %s59_s21, [#allocation5], %s1667_s0, %s1667_s0, %s1668_s17  }
  0x24   :  { %1662 = dma.done.wait [#allocation3], 2048  }
  0x25   :  { %1663 = vsyncadd [#allocation3], 4294965248 }
  0x26   :  { %1664 = dma.done.wait [#allocation5], 2048  }
  0x27   :  { %1665 = vsyncadd [#allocation5], 4294965248  ;;  %v1670_v0 = vmov 0.0   ;;  %vm1671_vm0 = vmmov 0   ;;  %v1672_v1 = vmov 0.0|0.0   ;;  %vm94_vm1 = vcmask 1043456  }
  0x28   :  { %1204 = vmatprep.subr.mxu0 %v1670_v0  ;;  %1206 = vmatprep.mubr.msk.f32.mxu0 %vm1671_vm0, %v1670_v0  ;;  %vm90_vm2 = vcmask 31744   ;;  %v82_v2 = vld [vmem:[%s2148_s8] sm:$0xf]  ;;  %s2158_s19 = sld [smem:[#allocation8_spill]]  ;;  %v170_v5 = vld [vmem:[#allocation2 + $0x8] sm:$0xff]  ;;  %v171_v6 = vld [vmem:[#allocation2 + $0x10] sm:$0xff] }
  0x29   :  { %1451 = vmatprep.subr.bf16.mxu1 %v1672_v1  ;;  %1241 = vmatprep.mubr.msk.f32.mxu1 %vm1671_vm0, %v1670_v0  ;;  %v169_v4 = vld [vmem:[#allocation2] sm:$0xff]  ;;  %v172_v7 = vld [vmem:[#allocation2 + $0x18] sm:$0xff]  ;;  %v174_v11 = vld [vmem:[#allocation2 + $0x28] sm:$0xff]  ;;  %s1675_s23 = smov 3   ;;  %s1676_s24 = smov 127   ;;  %vm1060_vm6 = vcmask 7168  }
  0x2a   :  { %1205 = vmatpush3.msk.msra.mxu0 %vm94_vm1, %v82_v2  ;;  %v1452_v8 = vpack.c.bf16 %v170_v5, %v169_v4  ;;  %v1455_v9 = vpack.c.bf16 %v172_v7, %v171_v6  ;;  %v173_v10 = vld [vmem:[#allocation2 + $0x20] sm:$0xff]  ;;  %v175_v13 = vld [vmem:[#allocation2 + $0x30] sm:$0xff]  ;;  %v176_v14 = vld [vmem:[#allocation2 + $0x38] sm:$0xff]  ;;  %s1678_s26 = smov 125   ;;  %vm1062_vm7 = vcmask 15360   ;;  %vm1064_vm8 = vcmask 23552  }
  0x2b   :  { %1475 = vmatprep.subr.bf16.mxu0 %v1672_v1  ;;  %v1458_v12 = vpack.c.bf16 %v174_v11, %v173_v10  ;;  %v1461_v15 = vpack.c.bf16 %v176_v14, %v175_v13  ;;  %v177_v16 = vld [vmem:[#allocation2 + $0x40] sm:$0xff]  ;;  %v178_v17 = vld [vmem:[#allocation2 + $0x48] sm:$0xff]  ;;  %v179_v19 = vld [vmem:[#allocation2 + $0x50] sm:$0xff] }
  0x2c   :  { %1453 = vmatpush3.bf16.msra.mxu1 %v1452_v8  ;;  %v1464_v18 = vpack.c.bf16 %v178_v17, %v177_v16  ;;  %v180_v20 = vld [vmem:[#allocation2 + $0x58] sm:$0xff]  ;;  %v181_v22 = vld [vmem:[#allocation2 + $0x60] sm:$0xff]  ;;  %v182_v23 = vld [vmem:[#allocation2 + $0x68] sm:$0xff] }
  0x2d   :  { %1454 = vmatprep.subr.bf16.mxu1 %v1672_v1  ;;  %v1467_v21 = vpack.c.bf16 %v180_v20, %v179_v19  ;;  %v1470_v24 = vpack.c.bf16 %v182_v23, %v181_v22  ;;  %v183_v25 = vld [vmem:[#allocation2 + $0x70] sm:$0xff]  ;;  %v184_v26 = vld [vmem:[#allocation2 + $0x78] sm:$0xff]  ;;  %v263_v28 = vld [vmem:[#allocation4] sm:$0xff] }
  0x2e   :  { %v1800_v3 = vld [vmem:[%s2158_s19] sm:$0xff]  ;;  %v1473_v27 = vpack.c.bf16 %v184_v26, %v183_v25  ;;  %v264_v29 = vld [vmem:[#allocation4 + $0x8] sm:$0xff]  ;;  %v265_v30 = vld [vmem:[#allocation4 + $0x10] sm:$0xff] }
  0x2f   :  { %1207 = vmatmul.mubr.msk.f32.vlgmr.msra.gmra.mrb[0].mxu0 %vm90_vm2, %v1800_v3  ;;  %v1476_v31 = vpack.c.bf16 %v264_v29, %v263_v28  ;;  %v266_v32 = vld [vmem:[#allocation4 + $0x18] sm:$0xff]  ;;  %v267_v34 = vld [vmem:[#allocation4 + $0x20] sm:$0xff]  ;;  %v268_v35 = vld [vmem:[#allocation4 + $0x28] sm:$0xff] }
  0x30   :  { %1276 = vmatprep.mubr.msk.f32.mxu0 %vm1671_vm0, %v1670_v0  ;;  %1456 = vmatpush3.bf16.msra.mxu1 %v1455_v9  ;;  %v1479_v33 = vpack.c.bf16 %v266_v32, %v265_v30  ;;  %v1482_v36 = vpack.c.bf16 %v268_v35, %v267_v34  ;;  %v269_v37 = vld [vmem:[#allocation4 + $0x30] sm:$0xff]  ;;  %v270_v38 = vld [vmem:[#allocation4 + $0x38] sm:$0xff]  ;;  %v271_v40 = vld [vmem:[#allocation4 + $0x40] sm:$0xff] }
  0x31   :  { %1457 = vmatprep.subr.bf16.mxu1 %v1672_v1  ;;  %1477 = vmatpush3.bf16.msra.mxu0 %v1476_v31  ;;  %v1485_v39 = vpack.c.bf16 %v270_v38, %v269_v37  ;;  %v272_v41 = vld [vmem:[#allocation4 + $0x48] sm:$0xff]  ;;  %v273_v43 = vld [vmem:[#allocation4 + $0x50] sm:$0xff]  ;;  %v274_v44 = vld [vmem:[#allocation4 + $0x58] sm:$0xff] }
  0x32   :  { %1478 = vmatprep.subr.bf16.mxu0 %v1672_v1  ;;  %v1488_v42 = vpack.c.bf16 %v272_v41, %v271_v40  ;;  %v1491_v45 = vpack.c.bf16 %v274_v44, %v273_v43  ;;  %v275_v46 = vld [vmem:[#allocation4 + $0x60] sm:$0xff]  ;;  %v276_v47 = vld [vmem:[#allocation4 + $0x68] sm:$0xff]  ;;  %v277_v54 = vld [vmem:[#allocation4 + $0x70] sm:$0xff] }
  0x33   :  { %v1494_v48 = vpack.c.bf16 %v276_v47, %v275_v46  ;;  %v1073_v49 = vld [vmem:[%s2152_s12] ss:$0 sm:$0xff]  ;;  %v278_v55 = vld [vmem:[#allocation4 + $0x78] sm:$0xff]  ;;  %v358_v58 = vld [vmem:[%s2151_s11 + $0x8] sm:$0xff] }
  0x34   :  { %1459 = vmatpush3.bf16.msra.mxu1 %v1458_v12  ;;  %v1497_v56 = vpack.c.bf16 %v278_v55, %v277_v54  ;;  %v357_v57 = vld [vmem:[%s2151_s11] sm:$0xff]  ;;  %v359_v59 = vld [vmem:[%s2151_s11 + $0x10] sm:$0xff]  ;;  %v360_v61 = vld [vmem:[%s2151_s11 + $0x18] sm:$0xff] }
  0x35   :  { %1460 = vmatprep.subr.bf16.mxu1 %v1672_v1  ;;  %1480 = vmatpush3.bf16.msra.mxu0 %v1479_v33  ;;  %v1500_v60 = vpack.c.bf16 %v358_v58, %v357_v57  ;;  %v1503_v62 = vpack.c.bf16 %v360_v61, %v359_v59  ;;  %v361_v63 = vld [vmem:[%s2151_s11 + $0x20] sm:$0xff]  ;;  %v362_v2 = vld [vmem:[%s2151_s11 + $0x28] sm:$0xff]  ;;  %v363_v5 = vld [vmem:[%s2151_s11 + $0x30] sm:$0xff] }
  0x36   :  { %1481 = vmatprep.subr.bf16.mxu0 %v1672_v1  ;;  %v1506_v4 = vpack.c.bf16 %v362_v2, %v361_v63  ;;  %v364_v6 = vld [vmem:[%s2151_s11 + $0x38] sm:$0xff]  ;;  %v365_v8 = vld [vmem:[%s2151_s11 + $0x40] sm:$0xff]  ;;  %v366_v9 = vld [vmem:[%s2151_s11 + $0x48] sm:$0xff] }
  0x37   :  { %v1509_v7 = vpack.c.bf16 %v364_v6, %v363_v5  ;;  %v1512_v10 = vpack.c.bf16 %v366_v9, %v365_v8  ;;  %v367_v11 = vld [vmem:[%s2151_s11 + $0x50] sm:$0xff]  ;;  %v368_v12 = vld [vmem:[%s2151_s11 + $0x58] sm:$0xff]  ;;  %v369_v14 = vld [vmem:[%s2151_s11 + $0x60] sm:$0xff] }
  0x38   :  { %1462 = vmatpush3.bf16.msra.mxu1 %v1461_v15  ;;  %v1515_v13 = vpack.c.bf16 %v368_v12, %v367_v11  ;;  %v370_v15 = vld [vmem:[%s2151_s11 + $0x68] sm:$0xff]  ;;  %v1076_v17 = vld [vmem:[%s2153_s13] ss:$0 sm:$0xff]  ;;  %v557_v26 = vld [vmem:[%s2142_s2 + $0x10] sm:$0xff] }
  0x39   :  { %1463 = vmatprep.subr.bf16.mxu1 %v1672_v1  ;;  %1483 = vmatpush3.bf16.msra.mxu0 %v1482_v36  ;;  %v1518_v16 = vpack.c.bf16 %v370_v15, %v369_v14  ;;  %v1884_v22 = vld [vmem:[%s2141_s1] sm:$0xf]  ;;  %v560_v30 = vld [vmem:[%s2142_s2 + $0x28] sm:$0xff]  ;;  %v562_v32 = vld [vmem:[%s2142_s2 + $0x38] sm:$0xff] }
  0x3a   :  { %1484 = vmatprep.subr.bf16.mxu0 %v1672_v1  ;;  %v555_v23 = vld [vmem:[%s2142_s2] sm:$0xff]  ;;  %v564_v35 = vld [vmem:[%s2142_s2 + $0x48] sm:$0xff]  ;;  %v565_v37 = vld [vmem:[%s2142_s2 + $0x50] sm:$0xff] }
  0x3b   :  { %v559_v29 = vld [vmem:[%s2142_s2 + $0x20] sm:$0xff]  ;;  %v566_v38 = vld [vmem:[%s2142_s2 + $0x58] sm:$0xff]  ;;  %v371_v40 = vld [vmem:[%s2151_s11 + $0x70] sm:$0xff] }
  0x3c   :  { %1465 = vmatpush3.bf16.msra.mxu1 %v1464_v18  ;;  %v1530_v31 = vpack.c.bf16 %v560_v30, %v559_v29  ;;  %v563_v34 = vld [vmem:[%s2142_s2 + $0x40] sm:$0xff]  ;;  %v372_v41 = vld [vmem:[%s2151_s11 + $0x78] sm:$0xff]  ;;  %v568_v44 = vld [vmem:[%s2142_s2 + $0x68] sm:$0xff]  ;;  %s1677_s11 = smov 126  }
  0x3d   :  { %1466 = vmatprep.subr.bf16.mxu1 %v1672_v1  ;;  %1486 = vmatpush3.bf16.msra.mxu0 %v1485_v39  ;;  %v1536_v36 = vpack.c.bf16 %v564_v35, %v563_v34  ;;  %v1539_v39 = vpack.c.bf16 %v566_v38, %v565_v37  ;;  %v567_v43 = vld [vmem:[%s2142_s2 + $0x60] sm:$0xff]  ;;  %v569_v46 = vld [vmem:[%s2142_s2 + $0x70] sm:$0xff]  ;;  %v570_v47 = vld [vmem:[%s2142_s2 + $0x78] sm:$0xff] }
  0x3e   :  { %1487 = vmatprep.subr.bf16.mxu0 %v1672_v1  ;;  %v1079_v57 = vld [vmem:[%s2145_s5] ss:$0 sm:$0xff]  ;;  %v680_v61 = vld [vmem:[%s2143_s3 + $0x18] sm:$0xff]  ;;  %v687_v29 = vld [vmem:[%s2143_s3 + $0x50] sm:$0xff] }
  0x3f   :  { %v681_v6 = vld [vmem:[%s2143_s3 + $0x20] sm:$0xff]  ;;  %v684_v14 = vld [vmem:[%s2143_s3 + $0x38] sm:$0xff]  ;;  %v799_v37 = vld [vmem:[%s2144_s4 + $0x8] sm:$0xff] }
  0x40   :  { %1468 = vmatpush3.bf16.msra.mxu1 %v1467_v21  ;;  %v688_v30 = vld [vmem:[%s2143_s3 + $0x58] sm:$0xff] }
  0x41   :  { %1469 = vmatprep.subr.bf16.mxu1 %v1672_v1  ;;  %1489 = vmatpush3.bf16.msra.mxu0 %v1488_v42  ;;  %v1521_v42 = vpack.c.bf16 %v372_v41, %v371_v40  ;;  %v692_v34 = vld [vmem:[%s2143_s3 + $0x78] sm:$0xff]  ;;  %v802_v41 = vld [vmem:[%s2144_s4 + $0x20] sm:$0xff] }
  0x42   :  { %1490 = vmatprep.subr.bf16.mxu0 %v1672_v1 }
  0x44   :  { %1471 = vmatpush3.bf16.msra.mxu1 %v1470_v24  ;;  %v556_v24 = vld [vmem:[%s2142_s2 + $0x8] sm:$0xff] }
  0x45   :  { %1472 = vmatprep.subr.bf16.mxu1 %v1672_v1  ;;  %1492 = vmatpush3.bf16.msra.mxu0 %v1491_v45  ;;  %v1524_v25 = vpack.c.bf16 %v556_v24, %v555_v23  ;;  %v1542_v45 = vpack.c.bf16 %v568_v44, %v567_v43  ;;  %v804_v44 = vld [vmem:[%s2144_s4 + $0x30] sm:$0xff] }
  0x46   :  { %1493 = vmatprep.subr.bf16.mxu0 %v1672_v1 }
  0x48   :  { %1474 = vmatpush3.bf16.msra.mxu1 %v1473_v27  ;;  %v558_v27 = vld [vmem:[%s2142_s2 + $0x18] sm:$0xff] }
  0x49   :  { %1499 = vmatprep.subr.bf16.mxu1 %v1672_v1  ;;  %1495 = vmatpush3.bf16.msra.mxu0 %v1494_v48  ;;  %v1527_v28 = vpack.c.bf16 %v558_v27, %v557_v26  ;;  %v1545_v48 = vpack.c.bf16 %v570_v47, %v569_v46  ;;  %v806_v47 = vld [vmem:[%s2144_s4 + $0x40] sm:$0xff] }
  0x4a   :  { %1496 = vmatprep.subr.bf16.mxu0 %v1672_v1 }
  0x4d   :  { %1498 = vmatpush3.bf16.msra.mxu0 %v1497_v56 }
  0x4e   :  { %1314 = vmatprep.subr.mxu0 %v1670_v0 }
 0x102   :  { %v164_v50 = vpop.f32.mrb[0].mxu0 }
 0x103   :  { %v165_v51 = vadd.f32 %v1073_v49, %v164_v50  ;;  %v1208_v52 = vpop.f32.mrb[1].mxu0  ;;  %v535_v49 = vlaneseq  ;;  %v1077_v50 = vld [vmem:[%s2154_s14] ss:$0 sm:$0xff] }
 0x104   :  { %v678_v52 = vld [vmem:[%s2143_s3 + $0x8] sm:$0xff] }
 0x105   :  { %v168_v53 = vmax.f32 %v165_v51, 0.0  ;;  %v677_v51 = vld [vmem:[%s2143_s3] sm:$0xff]  ;;  %v536_v56 = vshrl.u32 %v535_v49, 7 }
 0x106   :  { %v1548_v58 = vpack.c.bf16 %v678_v52, %v677_v51  ;;  %v809_v51 = vld [vmem:[%s2144_s4 + $0x58] sm:$0xff] }
 0x107   :  { %1242 = vmatmul.mubr.f32.vlgmr.msra.gmra.mrb[0].mxu1 %v168_v53  ;;  %v542_v11 = vsub.s32 1, %v536_v56  ;;  %v552_v24 = vsub.s32 3, %v536_v56 }
 0x108   :  { %1311 = vmatprep.mubr.msk.f32.mxu1 %vm1671_vm0, %v1670_v0  ;;  %1501 = vmatpush3.bf16.msra.mxu1 %v1500_v60  ;;  %v679_v60 = vld [vmem:[%s2143_s3 + $0x10] sm:$0xff] }
 0x109   :  { %1502 = vmatprep.subr.bf16.mxu1 %v1672_v1  ;;  %v1551_v5 = vpack.c.bf16 %v680_v61, %v679_v60  ;;  %v553_v27 = vrot.slane %v1884_v22, %v552_v24 }
 0x10c   :  { %1504 = vmatpush3.bf16.msra.mxu1 %v1503_v62 }
 0x10d   :  { %1505 = vmatprep.subr.bf16.mxu1 %v1672_v1 }
 0x110   :  { %1507 = vmatpush3.bf16.msra.mxu1 %v1506_v4  ;;  %v537_v4 = vsub.s32 0, %v536_v56 }
 0x111   :  { %1508 = vmatprep.subr.bf16.mxu1 %v1672_v1 }
 0x114   :  { %1510 = vmatpush3.bf16.msra.mxu1 %v1509_v7  ;;  %v682_v7 = vld [vmem:[%s2143_s3 + $0x28] sm:$0xff] }
 0x115   :  { %1511 = vmatprep.subr.bf16.mxu1 %v1672_v1  ;;  %v1554_v12 = vpack.c.bf16 %v682_v7, %v681_v6 }
 0x118   :  { %1513 = vmatpush3.bf16.msra.mxu1 %v1512_v10  ;;  %v538_v10 = vrot.slane %v1884_v22, %v537_v4 }
 0x119   :  { %1514 = vmatprep.subr.bf16.mxu1 %v1672_v1 }
 0x11c   :  { %1516 = vmatpush3.bf16.msra.mxu1 %v1515_v13  ;;  %v683_v13 = vld [vmem:[%s2143_s3 + $0x30] sm:$0xff] }
 0x11d   :  { %1517 = vmatprep.subr.bf16.mxu1 %v1672_v1 }
 0x120   :  { %1519 = vmatpush3.bf16.msra.mxu1 %v1518_v16  ;;  %v543_v16 = vrot.slane %v1884_v22, %v542_v11 }
 0x121   :  { %1520 = vmatprep.subr.bf16.mxu1 %v1672_v1 }
 0x124   :  { %1522 = vmatpush3.bf16.msra.mxu1 %v1521_v42  ;;  %v803_v42 = vld [vmem:[%s2144_s4 + $0x28] sm:$0xff] }
 0x125   :  { %1547 = vmatprep.subr.bf16.mxu1 %v1672_v1  ;;  %v1579_v43 = vpack.c.bf16 %v803_v42, %v802_v41 }
 0x1da   :  { %v258_v18 = vpop.f32.mrb[0].mxu1 }
 0x1db   :  { %v259_v19 = vadd.f32 %v1076_v17, %v258_v18  ;;  %v1243_v20 = vpop.f32.mrb[1].mxu1  ;;  %v547_v17 = vsub.s32 2, %v536_v56  ;;  %v1557_v18 = vpack.c.bf16 %v684_v14, %v683_v13  ;;  %v811_v13 = vld [vmem:[%s2144_s4 + $0x68] sm:$0xff] }
 0x1dc   :  { %v686_v20 = vld [vmem:[%s2143_s3 + $0x48] sm:$0xff] }
 0x1dd   :  { %v262_v21 = vmax.f32 %v259_v19, 0.0  ;;  %v685_v19 = vld [vmem:[%s2143_s3 + $0x40] sm:$0xff]  ;;  %v548_v23 = vrot.slane %v1884_v22, %v547_v17 }
 0x1df   :  { %1277 = vmatmul.mubr.f32.vlgmr.msra.gmra.mrb[2].mxu0 %v262_v21 }
 0x1e0   :  { %1315 = vmatpush3.msk.msra.mxu0 %vm94_vm1, %v1884_v22  ;;  %1316 = vmatprep.mubr.msk.f32.mxu0 %vm1671_vm0, %v1670_v0  ;;  %v689_v22 = vld [vmem:[%s2143_s3 + $0x60] sm:$0xff] }
 0x1e1   :  { %1523 = vmatprep.subr.bf16.mxu0 %v1672_v1 }
 0x1e3   :  { %1317 = vmatmul.mubr.msk.f32.vlgmr.msra.gmra.mrb[4].mxu0 %vm90_vm2, %v1800_v3  ;;  %v561_v3 = vld [vmem:[%s2142_s2 + $0x30] sm:$0xff] }
 0x1e4   :  { %1525 = vmatpush3.bf16.msra.mxu0 %v1524_v25  ;;  %1351 = vmatprep.mubr.msk.f32.mxu0 %vm1671_vm0, %v1670_v0  ;;  %v1533_v33 = vpack.c.bf16 %v562_v32, %v561_v3  ;;  %v1560_v25 = vpack.c.bf16 %v686_v20, %v685_v19  ;;  %v690_v3 = vld [vmem:[%s2143_s3 + $0x68] sm:$0xff] }
 0x1e5   :  { %1526 = vmatprep.subr.bf16.mxu0 %v1672_v1  ;;  %v1566_v32 = vpack.c.bf16 %v690_v3, %v689_v22 }
 0x1e8   :  { %1528 = vmatpush3.bf16.msra.mxu0 %v1527_v28 }
 0x1e9   :  { %1529 = vmatprep.subr.bf16.mxu0 %v1672_v1 }
 0x1ec   :  { %1531 = vmatpush3.bf16.msra.mxu0 %v1530_v31  ;;  %v1563_v31 = vpack.c.bf16 %v688_v30, %v687_v29 }
 0x1ed   :  { %1532 = vmatprep.subr.bf16.mxu0 %v1672_v1 }
 0x1f0   :  { %1534 = vmatpush3.bf16.msra.mxu0 %v1533_v33  ;;  %v691_v33 = vld [vmem:[%s2143_s3 + $0x70] sm:$0xff] }
 0x1f1   :  { %1535 = vmatprep.subr.bf16.mxu0 %v1672_v1  ;;  %v1569_v35 = vpack.c.bf16 %v692_v34, %v691_v33 }
 0x1f4   :  { %1537 = vmatpush3.bf16.msra.mxu0 %v1536_v36  ;;  %v798_v36 = vld [vmem:[%s2144_s4] sm:$0xff] }
 0x1f5   :  { %1538 = vmatprep.subr.bf16.mxu0 %v1672_v1  ;;  %v1571_v38 = vpack.c.bf16 %v799_v37, %v798_v36 }
 0x1f8   :  { %1540 = vmatpush3.bf16.msra.mxu0 %v1539_v39  ;;  %v801_v39 = vld [vmem:[%s2144_s4 + $0x18] sm:$0xff] }
 0x1f9   :  { %1541 = vmatprep.subr.bf16.mxu0 %v1672_v1 }
 0x1fc   :  { %1543 = vmatpush3.bf16.msra.mxu0 %v1542_v45  ;;  %v805_v45 = vld [vmem:[%s2144_s4 + $0x38] sm:$0xff] }
 0x1fd   :  { %1544 = vmatprep.subr.bf16.mxu0 %v1672_v1  ;;  %v1583_v46 = vpack.c.bf16 %v805_v45, %v804_v44 }
 0x200   :  { %1546 = vmatpush3.bf16.msra.mxu0 %v1545_v48  ;;  %v807_v48 = vld [vmem:[%s2144_s4 + $0x48] sm:$0xff] }
 0x201   :  { %1572 = vmatprep.subr.bf16.mxu0 %v1571_v38  ;;  %v1587_v49 = vpack.c.bf16 %v807_v48, %v806_v47 }
 0x2b2   :  { %v352_v53 = vpop.f32.mrb[2].mxu0 }
 0x2b3   :  { %v353_v54 = vadd.f32 %v1077_v50, %v352_v53  ;;  %v1278_v55 = vpop.f32.mrb[3].mxu0  ;;  %v808_v50 = vld [vmem:[%s2144_s4 + $0x50] sm:$0xff] }
 0x2b4   :  { %v1591_v52 = vpack.c.bf16 %v809_v51, %v808_v50  ;;  %v1083_v55 = vld [vmem:[%s2146_s6] ss:$0 sm:$0xff] }
 0x2b5   :  { %v356_v59 = vmax.f32 %v353_v54, 0.0 }
 0x2b6   :  { %v527_v62 = vpop.f32.mrb[4].mxu0 }
 0x2b7   :  { %v528_v63 = vadd.f32 %v1079_v57, %v527_v62  ;;  %1312 = vmatmul.mubr.f32.vlgmr.msra.gmra.mrb[2].mxu1 %v356_v59  ;;  %v1318_v2 = vpop.f32.mrb[5].mxu0 }
 0x2b8   :  { %1549 = vmatpush3.bf16.msra.mxu1 %v1548_v58  ;;  %1398 = vmatprep.mubr.msk.f32.mxu1 %vm1671_vm0, %v1670_v0 }
 0x2b9   :  { %vm531_vm3 = vcmp.gt.f32.partialorder %v528_v63, 0.0  ;;  %1550 = vmatprep.subr.bf16.mxu1 %v1672_v1 }
 0x2ba   :  { %v1082_v8 = vsel %vm531_vm3, 1.0, %v1670_v0 }
 0x2bb   :  { %v534_v9 = vmul.f32 %v1082_v8, %v528_v63  ;;  %v539_v15 = vmul.f32 %v1082_v8, %v538_v10  ;;  %v544_v21 = vmul.f32 %v1082_v8, %v543_v16  ;;  %v549_v26 = vmul.f32 %v1082_v8, %v548_v23  ;;  %v813_v16 = vld [vmem:[%s2144_s4 + $0x78] sm:$0xff] }
 0x2bc   :  { %1552 = vmatpush3.bf16.msra.mxu1 %v1551_v5  ;;  %v554_v28 = vmul.f32 %v1082_v8, %v553_v27 }
 0x2bd   :  { %1352 = vmatmul.mubr.f32.vlgmr.msra.gmra.mrb[6].mxu0 %v534_v9  ;;  %1553 = vmatprep.subr.bf16.mxu1 %v1672_v1 }
 0x2be   :  { %1354 = vmatprep.mubr.msk.f32.mxu0 %vm1671_vm0, %v1670_v0  ;;  %1574 = vmatpush3.bf16.msra.mxu0 %v1571_v38 }
 0x2c0   :  { %1555 = vmatpush3.bf16.msra.mxu1 %v1554_v12  ;;  %v810_v12 = vld [vmem:[%s2144_s4 + $0x60] sm:$0xff] }
 0x2c1   :  { %1355 = vmatmul.mubr.f32.gmra.mrb[8].mxu0 %v539_v15  ;;  %1556 = vmatprep.subr.bf16.mxu1 %v1672_v1  ;;  %v1595_v14 = vpack.c.bf16 %v811_v13, %v810_v12  ;;  %v812_v15 = vld [vmem:[%s2144_s4 + $0x70] sm:$0xff] }
 0x2c2   :  { %1357 = vmatprep.mubr.msk.f32.mxu0 %vm1671_vm0, %v1670_v0  ;;  %v1599_v17 = vpack.c.bf16 %v813_v16, %v812_v15 }
 0x2c4   :  { %1558 = vmatpush3.bf16.msra.mxu1 %v1557_v18  ;;  %v1085_v18 = vld [vmem:[%s2147_s7] ss:$0 sm:$0xff]  ;;  %s1674_s7 = smov 2  }
 0x2c5   :  { %1358 = vmatmul.mubr.f32.gmra.mrb[10].mxu0 %v544_v21  ;;  %1559 = vmatprep.subr.bf16.mxu1 %v1672_v1 }
 0x2c6   :  { %1360 = vmatprep.mubr.msk.f32.mxu0 %vm1671_vm0, %v1670_v0 }
 0x2c8   :  { %1561 = vmatpush3.bf16.msra.mxu1 %v1560_v25 }
 0x2c9   :  { %1361 = vmatmul.mubr.f32.gmra.mrb[12].mxu0 %v549_v26  ;;  %1562 = vmatprep.subr.bf16.mxu1 %v1672_v1 }
 0x2ca   :  { %1363 = vmatprep.mubr.msk.f32.mxu0 %vm1671_vm0, %v1670_v0 }
 0x2cc   :  { %1564 = vmatpush3.bf16.msra.mxu1 %v1563_v31 }
 0x2cd   :  { %1364 = vmatmul.mubr.f32.gmra.mrb[14].mxu0 %v554_v28  ;;  %1565 = vmatprep.subr.bf16.mxu1 %v1672_v1 }
 0x2d0   :  { %1567 = vmatpush3.bf16.msra.mxu1 %v1566_v32 }
 0x2d1   :  { %1568 = vmatprep.subr.bf16.mxu1 %v1672_v1  ;;  %v800_v1 = vld [vmem:[%s2144_s4 + $0x10] sm:$0xff]  ;;  %s1673_s4 = smov 1  }
 0x2d2   :  { %v1575_v40 = vpack.c.bf16 %v801_v39, %v800_v1 }
 0x2d4   :  { %1570 = vmatpush3.bf16.msra.mxu1 %v1569_v35  ;;  %1576 = vmatprep.subr.bf16.mxu0 %v1575_v40 }
 0x2d5   :  { %1578 = vmatpush3.bf16.msra.mxu0 %v1575_v40 }
 0x2d6   :  { %1580 = vmatprep.subr.bf16.mxu0 %v1579_v43 }
 0x2d9   :  { %1582 = vmatpush3.bf16.msra.mxu0 %v1579_v43 }
 0x2da   :  { %1584 = vmatprep.subr.bf16.mxu0 %v1583_v46 }
 0x2dd   :  { %1586 = vmatpush3.bf16.msra.mxu0 %v1583_v46 }
 0x2de   :  { %1588 = vmatprep.subr.bf16.mxu0 %v1587_v49 }
 0x2e1   :  { %1590 = vmatpush3.bf16.msra.mxu0 %v1587_v49 }
 0x2e2   :  { %1592 = vmatprep.subr.bf16.mxu0 %v1591_v52 }
 0x2e5   :  { %1594 = vmatpush3.bf16.msra.mxu0 %v1591_v52  ;;  %v1078_v52 = vld [vmem:[%s2155_s15] ss:$0 sm:$0xff] }
 0x2e6   :  { %1596 = vmatprep.subr.bf16.mxu0 %v1595_v14 }
 0x2e9   :  { %1598 = vmatpush3.bf16.msra.mxu0 %v1595_v14 }
 0x2ea   :  { %1600 = vmatprep.subr.bf16.mxu0 %v1599_v17 }
 0x2ed   :  { %1602 = vmatpush3.bf16.msra.mxu0 %v1599_v17 }
 0x38a   :  { %v2069_v53 = vpop.f32.mrb[2].mxu1 }
 0x38b   :  { %v1313_v54 = vpop.f32.mrb[3].mxu1 }
 0x38c   :  { %v447_v54 = vadd.f32 %v1078_v52, %v2069_v53 }
 0x390   :  { %v637_v56 = vpop.f32.mrb[6].mxu0 }
 0x391   :  { %v668_v57 = vadd.f32 %v1083_v55, %v637_v56  ;;  %v1353_v58 = vpop.f32.mrb[7].mxu0 }
 0x393   :  { %vm669_vm4 = vcmp.gt.f32.partialorder %v668_v57, 0.0 }
 0x394   :  { %v1084_v59 = vsel %vm669_vm4, 1.0, %v1670_v0  ;;  %v642_v60 = vpop.f32.mrb[8].mxu0 }
 0x395   :  { %v672_v61 = vmul.f32 %v1084_v59, %v668_v57  ;;  %v673_v62 = vmul.f32 %v1084_v59, %v642_v60  ;;  %v1356_v63 = vpop.f32.mrb[9].mxu0 }
 0x397   :  { %1399 = vmatmul.mubr.f32.vlgmr.msra.gmra.mrb[4].mxu1 %v672_v61 }
 0x398   :  { %v647_v2 = vpop.f32.mrb[10].mxu0  ;;  %1401 = vmatprep.mubr.msk.f32.mxu1 %vm1671_vm0, %v1670_v0 }
 0x399   :  { %v674_v4 = vmul.f32 %v1084_v59, %v647_v2  ;;  %v1359_v5 = vpop.f32.mrb[11].mxu0 }
 0x39b   :  { %1402 = vmatmul.mubr.f32.gmra.mrb[6].mxu1 %v673_v62 }
 0x39c   :  { %v652_v6 = vpop.f32.mrb[12].mxu0  ;;  %1404 = vmatprep.mubr.msk.f32.mxu1 %vm1671_vm0, %v1670_v0 }
 0x39d   :  { %v675_v7 = vmul.f32 %v1084_v59, %v652_v6  ;;  %v1362_v8 = vpop.f32.mrb[13].mxu0 }
 0x39f   :  { %1405 = vmatmul.mubr.f32.gmra.mrb[8].mxu1 %v674_v4 }
 0x3a0   :  { %v657_v9 = vpop.f32.mrb[14].mxu0  ;;  %1407 = vmatprep.mubr.msk.f32.mxu1 %vm1671_vm0, %v1670_v0 }
 0x3a1   :  { %v676_v10 = vmul.f32 %v1084_v59, %v657_v9  ;;  %v1365_v11 = vpop.f32.mrb[15].mxu0 }
 0x3a3   :  { %1408 = vmatmul.mubr.f32.gmra.mrb[10].mxu1 %v675_v7 }
 0x3a4   :  { %1410 = vmatprep.mubr.msk.f32.mxu1 %vm1671_vm0, %v1670_v0 }
 0x3a7   :  { %1411 = vmatmul.mubr.f32.gmra.mrb[12].mxu1 %v676_v10 }
 0x46a   :  { %v759_v19 = vpop.f32.mrb[4].mxu1 }
 0x46b   :  { %v790_v20 = vadd.f32 %v1085_v18, %v759_v19  ;;  %v1400_v21 = vpop.f32.mrb[5].mxu1 }
 0x46d   :  { %vm791_vm5 = vcmp.gt.f32.partialorder %v790_v20, 0.0 }
 0x46e   :  { %v1086_v23 = vsel %vm791_vm5, 1.0, %v1670_v0  ;;  %v764_v24 = vpop.f32.mrb[6].mxu1 }
 0x46f   :  { %v794_v25 = vmul.f32 %v1086_v23, %v764_v24  ;;  %v1403_v26 = vpop.f32.mrb[7].mxu1 }
 0x470   :  { %v967_v26 = vsub.f32 0.0, %v447_v54 }
 0x471   :  { %1445 = vmatprep.mubr.f32.mxu0 %v794_v25 }
 0x472   :  { %v769_v27 = vpop.f32.mrb[8].mxu1 }
 0x473   :  { %v795_v28 = vmul.f32 %v1086_v23, %v769_v27  ;;  %v1406_v29 = vpop.f32.mrb[9].mxu1 }
 0x475   :  { %1446 = vmatmul.mubr.f32.vlgmr.msra.gmra.mrb[16].mxu0 %v795_v28 }
 0x476   :  { %v774_v30 = vpop.f32.mrb[10].mxu1 }
 0x477   :  { %v796_v31 = vmul.f32 %v1086_v23, %v774_v30  ;;  %v1409_v22 = vpop.f32.mrb[11].mxu1 }
 0x479   :  { %1448 = vmatprep.mubr.f32.mxu0 %v796_v31 }
 0x47a   :  { %v779_v3 = vpop.f32.mrb[12].mxu1 }
 0x47b   :  { %v797_v32 = vmul.f32 %v1086_v23, %v779_v3  ;;  %v1412_v33 = vpop.f32.mrb[13].mxu1 }
 0x47d   :  { %1449 = vmatmul.mubr.f32.gmra.mrb[18].mxu0 %v797_v32 }
 0x548   :  { %v1447_v34 = vpop.f32.mrb[16].mxu0 }
 0x549   :  { %v880_v35 = vpop.f32.mrb[17].mxu0 }
 0x550   :  { %v1450_v36 = vpop.f32.mrb[18].mxu0 }
 0x551   :  { %922 = vrot.lane.b32.xlu1 %v1450_v36, %s1673_s4  ;;  %918 = vrot.lane.b32.xlu0 %v1450_v36, %s1674_s7  ;;  %v890_v0 = vpop.f32.mrb[19].mxu0 }
 0x555   :  { %905 = vrot.lane.b32.xlu1 %v890_v0, %s1674_s7  ;;  %914 = vrot.lane.b32.xlu0 %v890_v0, %s1673_s4 }
 0x559   :  { %910 = vrot.lane.b32.xlu0 %v1450_v36, %s1675_s23 }
 0x5c3   :  { %v919_v37 = vpop.permute.xlu0 %918  ;;  %v923_v40 = vpop.permute.xlu1 %922 }
 0x5c4   :  { %v921_v1 = vsub.f32 %v1447_v34, %v919_v37  ;;  %v925_v41 = vsub.f32 %v890_v0, %v923_v40 }
 0x5c6   :  { %932 = vrot.lane.b32.xlu1 %v921_v1, %s1676_s24 }
 0x5c7   :  { %v915_v38 = vpop.permute.xlu0 %914  ;;  %v906_v42 = vpop.permute.xlu1 %905 }
 0x5c8   :  { %v917_v39 = vsub.f32 %v1447_v34, %v915_v38  ;;  %v908_v43 = vsub.f32 %v880_v35, %v906_v42 }
 0x5ca   :  { %900 = vrot.lane.b32.xlu1 %v1447_v34, %s1673_s4  ;;  %942 = vrot.lane.b32.xlu0 %v917_v39, %s1673_s4 }
 0x5cb   :  { %v911_v44 = vpop.permute.xlu0 %910 }
 0x5cc   :  { %v913_v47 = vsub.f32 %v880_v35, %v911_v44 }
 0x5ce   :  { %927 = vrot.lane.b32.xlu0 %v925_v41, %s1677_s11 }
 0x638   :  { %v933_v45 = vpop.permute.xlu1 %932 }
 0x639   :  { %v935_v46 = vmul.f32 %v933_v45, %v908_v43  ;;  %v954_v55 = vmul.f32 %v933_v45, %v447_v54 }
 0x63b   :  { %937 = vrot.lane.b32.xlu1 %v935_v46, %s1676_s24 }
 0x63c   :  { %v943_v48 = vpop.permute.xlu0 %942  ;;  %v901_v50 = vpop.permute.xlu1 %900 }
 0x63d   :  { %v945_v49 = vmul.f32 %v943_v48, %v913_v47  ;;  %v903_v51 = vsub.f32 %v880_v35, %v901_v50  ;;  %v960_v56 = vmul.f32 %v943_v48, %v447_v54 }
 0x63f   :  { %973 = vrot.lane.b32.xlu1 %v913_v47, %s1676_s24  ;;  %947 = vrot.lane.b32.xlu0 %v945_v49, %s1677_s11 }
 0x640   :  { %v928_v57 = vpop.permute.xlu0 %927 }
 0x641   :  { %v930_v59 = vmul.f32 %v928_v57, %v903_v51  ;;  %v953_v17 = vmul.f32 %v928_v57, %v447_v54 }
 0x643   :  { %983 = vrot.lane.b32.xlu1 %v908_v43, %s1673_s4  ;;  %1001 = vrot.lane.b32.xlu0 %v913_v47, %s1677_s11 }
 0x647   :  { %1011 = vrot.lane.b32.xlu1 %v903_v51, %s1674_s7  ;;  %1025 = vrot.lane.b32.xlu0 %v908_v43, %s1676_s24 }
 0x64b   :  { %968 = vrot.lane.b32.xlu1 %v925_v41, %s1678_s26  ;;  %1034 = vrot.lane.b32.xlu0 %v903_v51, %s1673_s4 }
 0x64f   :  { %956 = vrot.lane.b32.xlu1 %v954_v55, %s1676_s24  ;;  %997 = vrot.lane.b32.xlu0 %v921_v1, %s1678_s26 }
 0x653   :  { %1021 = vrot.lane.b32.xlu1 %v917_v39, %s1677_s11 }
 0x657   :  { %962 = vrot.lane.b32.xlu1 %v960_v56, %s1677_s11 }
 0x6ad   :  { %v938_v58 = vpop.permute.xlu1 %937 }
 0x6ae   :  { %v940_v60 = vsub.f32 %v930_v59, %v938_v58 }
 0x6b1   :  { %v974_v53 = vpop.permute.xlu1 %973  ;;  %v948_v61 = vpop.permute.xlu0 %947 }
 0x6b2   :  { %v976_v62 = vmul.f32 %v974_v53, %v447_v54  ;;  %v950_v63 = vadd.f32 %v948_v61, %v940_v60 }
 0x6b4   :  { %1616 = vrcp.f32 %v950_v63  ;;  %978 = vrot.lane.b32.xlu0 %v976_v62, %s1677_s11 }
 0x6b5   :  { %v984_v2 = vpop.permute.xlu1 %983  ;;  %v1002_v4 = vpop.permute.xlu0 %1001 }
 0x6b6   :  { %v1004_v5 = vmul.f32 %v1002_v4, %v447_v54  ;;  %v986_v12 = vmul.f32 %v984_v2, %v447_v54 }
 0x6b8   :  { %1006 = vrot.lane.b32.xlu0 %v1004_v5, %s1676_s24 }
 0x6b9   :  { %v1012_v6 = vpop.permute.xlu1 %1011  ;;  %v1026_v7 = vpop.permute.xlu0 %1025 }
 0x6ba   :  { %v1014_v8 = vmul.f32 %v1012_v6, %v447_v54  ;;  %v1028_v9 = vmul.f32 %v1026_v7, %v447_v54 }
 0x6bc   :  { %1016 = vrot.lane.b32.xlu0 %v1014_v8, %s1678_s26  ;;  %1030 = vrot.lane.b32.xlu1 %v1028_v9, %s1676_s24 }
 0x6bd   :  { %v969_v10 = vpop.permute.xlu1 %968  ;;  %v1035_v13 = vpop.permute.xlu0 %1034 }
 0x6be   :  { %v1617_v11 = vpop.eup %1616  ;;  %v1037_v15 = vmul.f32 %v1035_v13, %v447_v54  ;;  %v971_v30 = vmul.f32 %v969_v10, %v967_v26 }
 0x6c0   :  { %988 = vrot.lane.b32.xlu0 %v986_v12, %s1678_s26  ;;  %993 = vrot.lane.b32.xlu1 %v1617_v11, %s1676_s24 }
 0x6c1   :  { %v957_v14 = vpop.permute.xlu1 %956  ;;  %v998_v23 = vpop.permute.xlu0 %997 }
 0x6c2   :  { %v959_v18 = vsub.f32 %v953_v17, %v957_v14  ;;  %v1000_v27 = vmul.f32 %v998_v23, %v447_v54 }
 0x6c4   :  { %1039 = vrot.lane.b32.xlu0 %v1037_v15, %s1677_s11 }
 0x6c5   :  { %v1022_v16 = vpop.permute.xlu1 %1021 }
 0x6c6   :  { %v1024_v34 = vmul.f32 %v1022_v16, %v967_v26 }
 0x6c9   :  { %v963_v19 = vpop.permute.xlu1 %962 }
 0x6ca   :  { %v965_v20 = vadd.f32 %v963_v19, %v959_v18 }
 0x6cc   :  { %v966_v21 = vmul.f32 %v1617_v11, %v965_v20 }
 0x6ce   :  { %1045 = vrot.lane.b32.xlu1 %v966_v21, %s1676_s24 }
 0x726   :  { %v979_v24 = vpop.permute.xlu0 %978 }
 0x727   :  { %v981_v22 = vadd.f32 %v979_v24, %v971_v30 }
 0x72a   :  { %v1007_v25 = vpop.permute.xlu0 %1006 }
 0x72b   :  { %v1009_v31 = vsub.f32 %v1000_v27, %v1007_v25 }
 0x72e   :  { %v1031_v28 = vpop.permute.xlu1 %1030  ;;  %v1017_v29 = vpop.permute.xlu0 %1016 }
 0x72f   :  { %v1019_v3 = vadd.f32 %v1017_v29, %v1009_v31  ;;  %v1033_v0 = vadd.f32 %v1031_v28, %v1024_v34 }
 0x732   :  { %v994_v32 = vpop.permute.xlu1 %993  ;;  %v989_v33 = vpop.permute.xlu0 %988 }
 0x733   :  { %v1020_v35 = vmul.f32 %v1019_v3, %v994_v32  ;;  %v991_v36 = vsub.f32 %v981_v22, %v989_v33 }
 0x735   :  { %v996_v37 = vmul.f32 %v994_v32, %v991_v36  ;;  %1053 = vrot.lane.b32.xlu1 %v1020_v35, %s1674_s7 }
 0x736   :  { %v1040_v1 = vpop.permute.xlu0 %1039 }
 0x737   :  { %v1042_v38 = vsub.f32 %v1033_v0, %v1040_v1  ;;  %1049 = vrot.lane.b32.xlu0 %v996_v37, %s1673_s4 }
 0x739   :  { %v1043_v39 = vmul.f32 %v1042_v38, %v994_v32 }
 0x73b   :  { %1057 = vrot.lane.b32.xlu0 %v1043_v39, %s1675_s23 }
 0x740   :  { %v1046_v40 = vpop.permute.xlu1 %1045 }
 0x7a7   :  { %v1054_v43 = vpop.permute.xlu1 %1053 }
 0x7a9   :  { %v1050_v41 = vpop.permute.xlu0 %1049 }
 0x7aa   :  { %v1061_v42 = vsel %vm1060_vm6, %v1046_v40, %v1050_v41 }
 0x7ab   :  { %v1063_v44 = vsel %vm1062_vm7, %v1061_v42, %v1054_v43 }
 0x7ad   :  { %v1058_v45 = vpop.permute.xlu0 %1057 }
 0x7ae   :  { %v1065_v46 = vsel %vm1064_vm8, %v1063_v44, %v1058_v45 }
 0x7af   :  { %1066 = vst.msk [vmem:[%s2156_s16] sm:$0xff] %vm90_vm2, %v1065_v46 }
 0x7b0   :  { %1071 = vsyncpa [#allocation3], 1 }
 0x7b1   :  { %1072 = vsyncpa [#allocation5], 1 }

</bundles_post_ra>
